<compile_context>
chip_gen: v6e
topology: v6e:2x2x1
jax: 0.10.0
libtpu: 0.0.40
codegen_flags: <defaults>
</compile_context>

<pallas_src>
import dataclasses

import jax
import jax.numpy as jnp
from jax.experimental import pallas as pl
from jax.experimental.pallas import tpu as pltpu

_LANE = 128  # vreg lane width (last dim)


def _round_up(x, m):
    return (x + m - 1) // m * m


def _sublane(dtype):
    # f32 -> 8, bf16 -> 16, int8/fp8 -> 32 (sub-32-bit dtypes pack along sublanes).
    return 8 * max(1, 4 // jnp.dtype(dtype).itemsize)


def _vmem_budget_bytes():
    """75% of the physical per-TC VMEM; conservative 48 MiB fallback (v7x-safe)."""
    try:
        cap = int(pltpu.get_tpu_info().vmem_capacity_bytes)
    except Exception:
        cap = 64 * 2**20
    return int(0.75 * cap)


# ----------------------------------------------------------------------------
# Kernels
# ----------------------------------------------------------------------------

def _silu_f32(h):
    # Exact SiLU: sigmoid(h) = 0.5 * (1 + tanh(h/2)) -> single EUP push, no inf.
    return h * (0.5 * jnp.tanh(0.5 * h) + 0.5)


def _mlp_kernel_resident(x_ref, w1_ref, b1_ref, w2_ref, b2_ref, o_ref):
    # hidden = SiLU(x @ W1 + b1) computed in f32 (v5e has no bf16 VPU/EUP).
    h = jnp.dot(x_ref[...], w1_ref[...], preferred_element_type=jnp.float32)
    h = _silu_f32(h + b1_ref[...])                       # (TB,H) + (1,H) broadcast
    y = jnp.dot(h.astype(w2_ref.dtype), w2_ref[...],
                preferred_element_type=jnp.float32)
    o_ref[...] = (y + b2_ref[...]).astype(o_ref.dtype)   # (TB,O) + (1,O) broadcast


def _mlp_kernel_htiled(x_ref, w1_ref, b1_ref, w2_ref, b2_ref, o_ref, acc_ref):
    # Grid = (batch tiles, hidden tiles); hidden axis innermost ("arbitrary").
    h_idx = pl.program_id(1)

    @pl.when(h_idx == 0)
    def _():
        acc_ref[...] = jnp.zeros_like(acc_ref)

    h = jnp.dot(x_ref[...], w1_ref[...], preferred_element_type=jnp.float32)
    h = _silu_f32(h + b1_ref[...])
    acc_ref[...] += jnp.dot(h.astype(w2_ref.dtype), w2_ref[...],
                            preferred_element_type=jnp.float32)

    @pl.when(h_idx == pl.num_programs(1) - 1)
    def _():
        o_ref[...] = (acc_ref[...] + b2_ref[...]).astype(o_ref.dtype)


# ----------------------------------------------------------------------------
# One-time parameter preparation (hoisted out of the forward path)
# ----------------------------------------------------------------------------

@dataclasses.dataclass(frozen=True)
class ANNParams:
    w1: jax.Array          # (In_p, H_p), compute dtype, lane-padded
    b1: jax.Array          # (1, H_p), f32
    w2: jax.Array          # (H_p, O_p), compute dtype, lane-padded
    b2: jax.Array          # (1, O_p), f32
    in_features: int
    hidden_features: int
    out_features: int
    compute_dtype: object


def prepare_ann_params(w1, b1, w2, b2, *, compute_dtype=jnp.float32):
    """Pad feature dims to 128-lane multiples and cast weights ONCE at init."""
    In, H = w1.shape
    H2, O = w2.shape
    assert H2 == H, "weight shapes inconsistent"
    cdt = jnp.dtype(compute_dtype)
    In_p, H_p, O_p = (_round_up(d, _LANE) for d in (In, H, O))

    w1_p = jnp.zeros((In_p, H_p), cdt).at[:In, :H].set(w1.astype(cdt))
    w2_p = jnp.zeros((H_p, O_p), cdt).at[:H, :O].set(w2.astype(cdt))
    b1_p = jnp.zeros((1, H_p), jnp.float32).at[:, :H].set(
        jnp.reshape(b1, (1, H)).astype(jnp.float32))
    b2_p = jnp.zeros((1, O_p), jnp.float32).at[:, :O].set(
        jnp.reshape(b2, (1, O)).astype(jnp.float32))
    return ANNParams(w1_p, b1_p, w2_p, b2_p, In, H, O, cdt)


# ----------------------------------------------------------------------------
# Forward
# ----------------------------------------------------------------------------

def ann_model_forward(x, params: ANNParams, *, out_dtype=jnp.float32,
                      max_batch_block=1024, force_h_tiling=False, h_block=None):
    """Fused MLP forward: SiLU(x @ W1 + b1) @ W2 + b2.  Returns (B, O)."""
    In, H, O = params.in_features, params.hidden_features, params.out_features
    cdt = jnp.dtype(params.compute_dtype)
    odt = jnp.dtype(out_dtype)

    B, In_x = x.shape
    assert In_x == In, "input feature dim mismatch"
    In_p, H_p = params.w1.shape
    _, O_p = params.w2.shape

    xsize = cdt.itemsize
    osize = odt.itemsize
    sub = max(_sublane(cdt), _sublane(odt))     # dtype-aware sublane rounding
    B_min = _round_up(B, sub)

    budget = _vmem_budget_bytes()
    headroom = 4 * 2**20

    # Budget the resident scheme conservatively at 2 buffers per weight operand
    # (even though Buffered(1) is requested) so the fallback path is still safe.
    resident_w = 2 * ((In_p * H_p + H_p * O_p) * xsize + (H_p + O_p) * 4)
    per_row_res = 2 * In_p * xsize + 2 * O_p * osize + H_p * 4 + O_p * 4
    avail_res = budget - headroom - resident_w
    use_resident = (not force_h_tiling) and avail_res >= per_row_res * sub

    cost = pl.CostEstimate(
        flops=2 * B_min * (In_p * H_p + H_p * O_p),
        transcendentals=B_min * H_p,  # one tanh per hidden element
        bytes_accessed=(B_min * In_p * xsize
                        + (In_p * H_p + H_p * O_p) * xsize
                        + (H_p + O_p) * 4
                        + B_min * O_p * osize),
    )

    def _pad_x(B_pad):
        # Skip the copy entirely when x is already lane/batch aligned + right dtype.
        if In == In_p and B == B_pad and x.dtype == cdt:
            return x
        return jnp.zeros((B_pad, In_p), cdt).at[:B, :In].set(x.astype(cdt))

    if use_resident:
        # ---- fully VMEM-resident weights, 1-D batch grid --------------------
        TB = int(min(max_batch_block, avail_res // per_row_res, B_min))
        TB = max(sub, (TB // sub) * sub)
        B_pad = _round_up(B_min, TB)
        grid = (B_pad // TB,)
        x_p = _pad_x(B_pad)

        footprint = resident_w + TB * per_row_res + headroom
        vmem_limit = int(min(budget, max(32 * 2**20, footprint)))

        def _call(single_buffer_weights):
            wkw = ({"pipeline_mode": pl.Buffered(1)}
                   if single_buffer_weights else {})
            in_specs = [
                pl.BlockSpec((TB, In_p), lambda i: (i, 0)),          # x: pipelined
                pl.BlockSpec((In_p, H_p), lambda i: (0, 0), **wkw),  # W1 resident
                pl.BlockSpec((1, H_p), lambda i: (0, 0), **wkw),     # b1 resident
                pl.BlockSpec((H_p, O_p), lambda i: (0, 0), **wkw),   # W2 resident
                pl.BlockSpec((1, O_p), lambda i: (0, 0), **wkw),     # b2 resident
            ]
            return pl.pallas_call(
                _mlp_kernel_resident,
                out_shape=jax.ShapeDtypeStruct((B_pad, O_p), odt),
                grid=grid,
                in_specs=in_specs,
                out_specs=pl.BlockSpec((TB, O_p), lambda i: (i, 0)),
                compiler_params=pltpu.CompilerParams(
                    dimension_semantics=("parallel",),
                    vmem_limit_bytes=vmem_limit),
                cost_estimate=cost,
            )(x_p, params.w1, params.b1, params.w2, params.b2)

        try:
            out_p = _call(True)
        except Exception:            # Buffered(1) unsupported -> default buffering
            out_p = _call(False)

    else:
        # ---- hidden-dim (reduction) tiled scheme: stream W1/W2 blocks -------
        if h_block is not None:
            TH = int(h_block)
            assert TH % _LANE == 0 and H_p % TH == 0, "h_block must tile H_p"
        else:
            TH = _LANE
            for cand in (2048, 1024, 512, 256, 128):
                if H_p % cand == 0:
                    TH = cand
                    break

        stream_w = 2 * ((In_p * TH + TH * O_p) * xsize + TH * 4 + O_p * 4)
        per_row_ht = 2 * In_p * xsize + 2 * O_p * osize + TH * 4 + 2 * O_p * 4
        avail = budget - headroom - stream_w
        TB = int(min(max_batch_block, max(avail, 0) // per_row_ht, B_min))
        TB = max(sub, (TB // sub) * sub)
        B_pad = _round_up(B_min, TB)
        grid = (B_pad // TB, H_p // TH)
        x_p = _pad_x(B_pad)

        footprint = stream_w + TB * per_row_ht + headroom
        vmem_limit = int(min(budget, max(32 * 2**20, footprint)))

        def _call(single_buffer_bias):
            b2kw = ({"pipeline_mode": pl.Buffered(1)}
                    if single_buffer_bias else {})
            in_specs = [
                pl.BlockSpec((TB, In_p), lambda i, h: (i, 0)),       # x per batch tile
                pl.BlockSpec((In_p, TH), lambda i, h: (0, h)),       # W1 hidden slab
                pl.BlockSpec((1, TH), lambda i, h: (0, h)),          # b1 hidden slab
                pl.BlockSpec((TH, O_p), lambda i, h: (h, 0)),        # W2 hidden slab
                pl.BlockSpec((1, O_p), lambda i, h: (0, 0), **b2kw), # b2 resident
            ]
            return pl.pallas_call(
                _mlp_kernel_htiled,
                out_shape=jax.ShapeDtypeStruct((B_pad, O_p), odt),
                grid=grid,
                in_specs=in_specs,
                out_specs=pl.BlockSpec((TB, O_p), lambda i, h: (i, 0)),
                scratch_shapes=[pltpu.VMEM((TB, O_p), jnp.float32)],
                compiler_params=pltpu.CompilerParams(
                    dimension_semantics=("parallel", "arbitrary"),
                    vmem_limit_bytes=vmem_limit),
                cost_estimate=cost,
            )(x_p, params.w1, params.b1, params.w2, params.b2)

        try:
            out_p = _call(True)
        except Exception:
            out_p = _call(False)

    if B_pad == B and O_p == O:
        return out_p
    return out_p[:B, :O]


# ----------------------------------------------------------------------------
# Reference + self-test
# ----------------------------------------------------------------------------

def _reference_forward(x, w1, b1, w2, b2):
    h = x @ w1 + b1.reshape(1, -1)
    h = h * jax.nn.sigmoid(h)
    return h @ w2 + b2.reshape(1, -1)


if __name__ == "__main__":
    key = jax.random.PRNGKey(0)

    # Case 1: resident-weight path, f32 (input=16, hidden=32, output=8, batch=64).
    B, In, H, O = 64, 16, 32, 8
    kx, kw1, kb1, kw2, kb2 = jax.random.split(key, 5)
    x = jax.random.normal(kx, (B, In), dtype=jnp.float32)
    w1 = jax.random.normal(kw1, (In, H), dtype=jnp.float32) * 0.1
    b1 = jax.random.normal(kb1, (1, H), dtype=jnp.float32) * 0.1
    w2 = jax.random.normal(kw2, (H, O), dtype=jnp.float32) * 0.1
    b2 = jax.random.normal(kb2, (1, O), dtype=jnp.float32) * 0.1
    ref = _reference_forward(x, w1, b1, w2, b2)

    params_f32 = prepare_ann_params(w1, b1, w2, b2, compute_dtype=jnp.float32)
    out = jax.block_until_ready(ann_model_forward(x, params_f32))
    assert out.shape == (B, O)
    assert jnp.allclose(out, ref, atol=1e-2, rtol=1e-2), "f32 resident path mismatch"

    # Case 2: bf16 compute path (v6e/v7x MXU-native); accumulation stays f32.
    params_bf16 = prepare_ann_params(w1, b1, w2, b2, compute_dtype=jnp.bfloat16)
    out_bf16 = jax.block_until_ready(ann_model_forward(x, params_bf16))
    assert out_bf16.shape == (B, O)
    assert jnp.allclose(out_bf16, ref, atol=5e-2, rtol=5e-2), "bf16 path mismatch"

    # Case 3: hidden-dim (reduction-axis) tiled path, forced, H=256 / TH=128
    # so the f32 accumulator is exercised across two grid steps.
    B2, In2, H2, O2 = 32, 16, 256, 8
    k2 = jax.random.split(key, 6)
    x2 = jax.random.normal(k2[0], (B2, In2), dtype=jnp.float32)
    w1b = jax.random.normal(k2[1], (In2, H2), dtype=jnp.float32) * 0.1
    b1b = jax.random.normal(k2[2], (1, H2), dtype=jnp.float32) * 0.1
    w2b = jax.random.normal(k2[3], (H2, O2), dtype=jnp.float32) * 0.1
    b2b = jax.random.normal(k2[4], (1, O2), dtype=jnp.float32) * 0.1
    ref2 = _reference_forward(x2, w1b, b1b, w2b, b2b)

    params2 = prepare_ann_params(w1b, b1b, w2b, b2b, compute_dtype=jnp.float32)
    out2 = jax.block_until_ready(
        ann_model_forward(x2, params2, force_h_tiling=True, h_block=128))
    assert out2.shape == (B2, O2)
    assert jnp.allclose(out2, ref2, atol=1e-2, rtol=1e-2), "h-tiled path mismatch"

    print("KERNEL_OK")
</pallas_src>

<mosaic_0001>
module attributes {stable_mosaic.version = 11 : i64} {
  func.func @_mlp_kernel_resident(%arg0: i32, %arg1: memref<64x128xf32, #tpu.memory_space<vmem>>, %arg2: memref<128x128xf32, #tpu.memory_space<vmem>>, %arg3: memref<1x128xf32, #tpu.memory_space<vmem>>, %arg4: memref<128x128xf32, #tpu.memory_space<vmem>>, %arg5: memref<1x128xf32, #tpu.memory_space<vmem>>, %arg6: memref<64x128xf32, #tpu.memory_space<vmem>>) attributes {dimension_semantics = [#tpu.dimension_semantics<parallel>], iteration_bounds = array<i64: 1>, scalar_prefetch = 0 : i64, scratch_operands = 0 : i64, tpu.core_type = #tpu.core_type<tc>, window_params = [{transform_indices = @transform_0, window_bounds = array<i64: 64, 128>}, {pipeline_mode = #tpu.pipeline_mode<synchronous>, transform_indices = @transform_1, window_bounds = array<i64: 128, 128>}, {pipeline_mode = #tpu.pipeline_mode<synchronous>, transform_indices = @transform_2, window_bounds = array<i64: 1, 128>}, {pipeline_mode = #tpu.pipeline_mode<synchronous>, transform_indices = @transform_3, window_bounds = array<i64: 128, 128>}, {pipeline_mode = #tpu.pipeline_mode<synchronous>, transform_indices = @transform_4, window_bounds = array<i64: 1, 128>}, {transform_indices = @transform_5, window_bounds = array<i64: 64, 128>}]} {
    %c0 = arith.constant 0 : index
    %c0_0 = arith.constant 0 : index
    %0 = vector.load %arg1[%c0, %c0_0] : memref<64x128xf32, #tpu.memory_space<vmem>>, vector<64x128xf32>
    %c0_1 = arith.constant 0 : index
    %c0_2 = arith.constant 0 : index
    %1 = vector.load %arg2[%c0_1, %c0_2] : memref<128x128xf32, #tpu.memory_space<vmem>>, vector<128x128xf32>
    %cst = arith.constant dense<0.000000e+00> : vector<64x128xf32>
    %2 = tpu.matmul %0, %1, %cst {dimension_numbers = #tpu.dot_dimension_numbers<[1], [0], [0], [1], [0, 0, 1, 1], [], []>} : vector<64x128xf32>, vector<128x128xf32>, vector<64x128xf32> -> vector<64x128xf32>
    %c0_3 = arith.constant 0 : index
    %c0_4 = arith.constant 0 : index
    %3 = vector.load %arg3[%c0_3, %c0_4] : memref<1x128xf32, #tpu.memory_space<vmem>>, vector<1x128xf32>
    %4 = vector.broadcast %3 : vector<1x128xf32> to vector<64x128xf32>
    %5 = arith.addf %2, %4 : vector<64x128xf32>
    %cst_5 = arith.constant 5.000000e-01 : f32
    %6 = vector.broadcast %cst_5 : f32 to vector<64x128xf32>
    %7 = arith.mulf %6, %5 : vector<64x128xf32>
    %8 = math.tanh %7 : vector<64x128xf32>
    %cst_6 = arith.constant 5.000000e-01 : f32
    %9 = vector.broadcast %cst_6 : f32 to vector<64x128xf32>
    %10 = arith.mulf %9, %8 : vector<64x128xf32>
    %cst_7 = arith.constant 5.000000e-01 : f32
    %11 = vector.broadcast %cst_7 : f32 to vector<64x128xf32>
    %12 = arith.addf %10, %11 : vector<64x128xf32>
    %13 = arith.mulf %5, %12 : vector<64x128xf32>
    %c0_8 = arith.constant 0 : index
    %c0_9 = arith.constant 0 : index
    %14 = vector.load %arg4[%c0_8, %c0_9] : memref<128x128xf32, #tpu.memory_space<vmem>>, vector<128x128xf32>
    %cst_10 = arith.constant dense<0.000000e+00> : vector<64x128xf32>
    %15 = tpu.matmul %13, %14, %cst_10 {dimension_numbers = #tpu.dot_dimension_numbers<[1], [0], [0], [1], [0, 0, 1, 1], [], []>} : vector<64x128xf32>, vector<128x128xf32>, vector<64x128xf32> -> vector<64x128xf32>
    %c0_11 = arith.constant 0 : index
    %c0_12 = arith.constant 0 : index
    %16 = vector.load %arg5[%c0_11, %c0_12] : memref<1x128xf32, #tpu.memory_space<vmem>>, vector<1x128xf32>
    %17 = vector.broadcast %16 : vector<1x128xf32> to vector<64x128xf32>
    %18 = arith.addf %15, %17 : vector<64x128xf32>
    %c0_13 = arith.constant 0 : index
    %c0_14 = arith.constant 0 : index
    %19 = vector.load %arg6[%c0_13, %c0_14] : memref<64x128xf32, #tpu.memory_space<vmem>>, vector<64x128xf32>
    tpu.vector_store %arg6[%c0_13, %c0_14], %18 {strides = array<i32>} : memref<64x128xf32, #tpu.memory_space<vmem>>, vector<64x128xf32>,
    return
  }
  func.func @transform_0(%arg0: i32) -> (i32, i32) {
    %c0_i32 = arith.constant 0 : i32
    %c0_i32_0 = arith.constant 0 : i32
    return %arg0, %c0_i32 : i32, i32
  }
  func.func @transform_1(%arg0: i32) -> (i32, i32) {
    %c0_i32 = arith.constant 0 : i32
    %c0_i32_0 = arith.constant 0 : i32
    %c0_i32_1 = arith.constant 0 : i32
    return %c0_i32, %c0_i32_0 : i32, i32
  }
  func.func @transform_2(%arg0: i32) -> (i32, i32) {
    %c0_i32 = arith.constant 0 : i32
    %c0_i32_0 = arith.constant 0 : i32
    %c0_i32_1 = arith.constant 0 : i32
    return %c0_i32, %c0_i32_0 : i32, i32
  }
  func.func @transform_3(%arg0: i32) -> (i32, i32) {
    %c0_i32 = arith.constant 0 : i32
    %c0_i32_0 = arith.constant 0 : i32
    %c0_i32_1 = arith.constant 0 : i32
    return %c0_i32, %c0_i32_0 : i32, i32
  }
  func.func @transform_4(%arg0: i32) -> (i32, i32) {
    %c0_i32 = arith.constant 0 : i32
    %c0_i32_0 = arith.constant 0 : i32
    %c0_i32_1 = arith.constant 0 : i32
    return %c0_i32, %c0_i32_0 : i32, i32
  }
  func.func @transform_5(%arg0: i32) -> (i32, i32) {
    %c0_i32 = arith.constant 0 : i32
    %c0_i32_0 = arith.constant 0 : i32
    return %arg0, %c0_i32 : i32, i32
  }
}

module attributes {stable_mosaic.version = 11 : i64} {
  func.func @_mlp_kernel_resident(%arg0: i32, %arg1: memref<64x128xf32, #tpu.memory_space<vmem>>, %arg2: memref<128x128xf32, #tpu.memory_space<vmem>>, %arg3: memref<1x128xf32, #tpu.memory_space<vmem>>, %arg4: memref<128x128xf32, #tpu.memory_space<vmem>>, %arg5: memref<1x128xf32, #tpu.memory_space<vmem>>, %arg6: memref<64x128xf32, #tpu.memory_space<vmem>>) attributes {dimension_semantics = [#tpu.dimension_semantics<parallel>], iteration_bounds = array<i64: 1>, scalar_prefetch = 0 : i64, scratch_operands = 0 : i64, tpu.core_type = #tpu.core_type<tc>, window_params = [{transform_indices = @transform_0, window_bounds = array<i64: 64, 128>}, {pipeline_mode = #tpu.pipeline_mode<synchronous>, transform_indices = @transform_1, window_bounds = array<i64: 128, 128>}, {pipeline_mode = #tpu.pipeline_mode<synchronous>, transform_indices = @transform_2, window_bounds = array<i64: 1, 128>}, {pipeline_mode = #tpu.pipeline_mode<synchronous>, transform_indices = @transform_3, window_bounds = array<i64: 128, 128>}, {pipeline_mode = #tpu.pipeline_mode<synchronous>, transform_indices = @transform_4, window_bounds = array<i64: 1, 128>}, {transform_indices = @transform_5, window_bounds = array<i64: 64, 128>}]} {
    %c0 = arith.constant 0 : index
    %c0_0 = arith.constant 0 : index
    %0 = vector.load %arg1[%c0, %c0_0] : memref<64x128xf32, #tpu.memory_space<vmem>>, vector<64x128xf32>
    %c0_1 = arith.constant 0 : index
    %c0_2 = arith.constant 0 : index
    %1 = vector.load %arg2[%c0_1, %c0_2] : memref<128x128xf32, #tpu.memory_space<vmem>>, vector<128x128xf32>
    %cst = arith.constant dense<0.000000e+00> : vector<64x128xf32>
    %2 = tpu.matmul %0, %1, %cst {dimension_numbers = #tpu.dot_dimension_numbers<[1], [0], [0], [1], [0, 0, 1, 1], [], []>} : vector<64x128xf32>, vector<128x128xf32>, vector<64x128xf32> -> vector<64x128xf32>
    %c0_3 = arith.constant 0 : index
    %c0_4 = arith.constant 0 : index
    %3 = vector.load %arg3[%c0_3, %c0_4] : memref<1x128xf32, #tpu.memory_space<vmem>>, vector<1x128xf32>
    %4 = vector.broadcast %3 : vector<1x128xf32> to vector<64x128xf32>
    %5 = arith.addf %2, %4 : vector<64x128xf32>
    %cst_5 = arith.constant 5.000000e-01 : f32
    %6 = vector.broadcast %cst_5 : f32 to vector<64x128xf32>
    %7 = arith.mulf %6, %5 : vector<64x128xf32>
    %8 = math.tanh %7 : vector<64x128xf32>
    %cst_6 = arith.constant 5.000000e-01 : f32
    %9 = vector.broadcast %cst_6 : f32 to vector<64x128xf32>
    %10 = arith.mulf %9, %8 : vector<64x128xf32>
    %cst_7 = arith.constant 5.000000e-01 : f32
    %11 = vector.broadcast %cst_7 : f32 to vector<64x128xf32>
    %12 = arith.addf %10, %11 : vector<64x128xf32>
    %13 = arith.mulf %5, %12 : vector<64x128xf32>
    %c0_8 = arith.constant 0 : index
    %c0_9 = arith.constant 0 : index
    %14 = vector.load %arg4[%c0_8, %c0_9] : memref<128x128xf32, #tpu.memory_space<vmem>>, vector<128x128xf32>
    %cst_10 = arith.constant dense<0.000000e+00> : vector<64x128xf32>
    %15 = tpu.matmul %13, %14, %cst_10 {dimension_numbers = #tpu.dot_dimension_numbers<[1], [0], [0], [1], [0, 0, 1, 1], [], []>} : vector<64x128xf32>, vector<128x128xf32>, vector<64x128xf32> -> vector<64x128xf32>
    %c0_11 = arith.constant 0 : index
    %c0_12 = arith.constant 0 : index
    %16 = vector.load %arg5[%c0_11, %c0_12] : memref<1x128xf32, #tpu.memory_space<vmem>>, vector<1x128xf32>
    %17 = vector.broadcast %16 : vector<1x128xf32> to vector<64x128xf32>
    %18 = arith.addf %15, %17 : vector<64x128xf32>
    %c0_13 = arith.constant 0 : index
    %c0_14 = arith.constant 0 : index
    %19 = vector.load %arg6[%c0_13, %c0_14] : memref<64x128xf32, #tpu.memory_space<vmem>>, vector<64x128xf32>
    tpu.vector_store %arg6[%c0_13, %c0_14], %18 {strides = array<i32>} : memref<64x128xf32, #tpu.memory_space<vmem>>, vector<64x128xf32>,
    return
  }
  func.func @transform_0(%arg0: i32) -> (i32, i32) {
    %c0_i32 = arith.constant 0 : i32
    %c0_i32_0 = arith.constant 0 : i32
    return %arg0, %c0_i32 : i32, i32
  }
  func.func @transform_1(%arg0: i32) -> (i32, i32) {
    %c0_i32 = arith.constant 0 : i32
    %c0_i32_0 = arith.constant 0 : i32
    %c0_i32_1 = arith.constant 0 : i32
    return %c0_i32, %c0_i32_0 : i32, i32
  }
  func.func @transform_2(%arg0: i32) -> (i32, i32) {
    %c0_i32 = arith.constant 0 : i32
    %c0_i32_0 = arith.constant 0 : i32
    %c0_i32_1 = arith.constant 0 : i32
    return %c0_i32, %c0_i32_0 : i32, i32
  }
  func.func @transform_3(%arg0: i32) -> (i32, i32) {
    %c0_i32 = arith.constant 0 : i32
    %c0_i32_0 = arith.constant 0 : i32
    %c0_i32_1 = arith.constant 0 : i32
    return %c0_i32, %c0_i32_0 : i32, i32
  }
  func.func @transform_4(%arg0: i32) -> (i32, i32) {
    %c0_i32 = arith.constant 0 : i32
    %c0_i32_0 = arith.constant 0 : i32
    %c0_i32_1 = arith.constant 0 : i32
    return %c0_i32, %c0_i32_0 : i32, i32
  }
  func.func @transform_5(%arg0: i32) -> (i32, i32) {
    %c0_i32 = arith.constant 0 : i32
    %c0_i32_0 = arith.constant 0 : i32
    return %arg0, %c0_i32 : i32, i32
  }
}

</mosaic_0001>

<bundles_post_ra>
// kernel: tpu_custom_call.1
= control target key start
LH: loop header
LB: loop body
LE: loop exit
PB: predicated region body
PF: predicated region fallthrough
CT: control target
= control target key end

     0   :  { %10 = vsyncpa [#allocation3], 0  ;;  %s704_s0 = inlined_call_operand.hbm [shape: f32[64,128], index: 0, kind: input, shape index: {}]   ;;  %s705_s1 = inlined_call_operand.hbm [shape: f32[128,128], index: 1, kind: input, shape index: {}]   ;;  %s706_s2 = inlined_call_operand.vmem [shape: f32[1,128], index: 2, kind: input, shape index: {}]   ;;  %s707_s3 = inlined_call_operand.hbm [shape: f32[128,128], index: 3, kind: input, shape index: {}]   ;;  %s708_s4 = inlined_call_operand.vmem [shape: f32[1,128], index: 4, kind: input, shape index: {}]   ;;  %s709_s5 = inlined_call_operand.hbm [shape: f32[64,128], index: 5, kind: output, shape index: {}]  }
   0x1   :  { %11 = vsyncpa [#allocation6], 0 }
   0x2   :  { %12 = vsyncpa [#allocation4], 0  ;;  %s638_s18 = smov [#allocation5]   ;;  %s639_s20 = smov [#allocation2]  }
   0x3   :  { %s30_s19 = sshll.u32 %s638_s18, 4  ;;  %s18_s21 = sshll.u32 %s639_s20, 4  ;;  %s31_s19 = int_to_ptr.vmem [resolvable:$true] %s30_s19  ;;  %s19_s21 = int_to_ptr.vmem [resolvable:$true] %s18_s21 }
   0x4   :  { %s560_s22 = scalar_lea.vmem %s31_s19, 2048  ;;  %p565_p1 = scmp.lt.s32.totalorder %s31_s19, %s31_s19 }
   0x5   :  { %p561_p0 = scmp.ne.s32.totalorder %s31_s19, %s560_s22  ;;  %p566_p2 = scmp.lt.s32.totalorder %s560_s22, %s560_s22 }
   0x7   :  { %p567_p3 = por %p566_p2, %p565_p1 }
   0x9   :  { %p568_p4 = pnand %p567_p3, %p561_p0 }
   0xb   :  { %571 = shalt.err (!%p568_p4)
}
   0xc   :  { %s640_s23 = smov 128   ;;  %s641_s24 = smov 8  }
   0xd   :  { %36 = dma.hbm_to_vmem [thread:$0]  %s705_s1, 2048, %s31_s19, [#allocation6], %s640_s23, %s640_s23, %s641_s24  }
   0xe   :  { %s580_s27 = scalar_lea.vmem %s19_s21, 1024  ;;  %p585_p6 = scmp.lt.s32.totalorder %s19_s21, %s19_s21 }
   0xf   :  { %p581_p5 = scmp.ne.s32.totalorder %s19_s21, %s580_s27  ;;  %p586_p7 = scmp.lt.s32.totalorder %s580_s27, %s580_s27 }
  0x11   :  { %p587_p8 = por %p586_p7, %p585_p6 }
  0x13   :  { %p588_p9 = pnand %p587_p8, %p581_p5 }
  0x15   :  { %591 = shalt.err (!%p588_p9)
}
  0x16   :  { %24 = dma.hbm_to_vmem [thread:$0]  %s704_s0, 1024, %s19_s21, [#allocation3], %s640_s23, %s640_s23, %s641_s24  }
  0x17   :  { %s642_s30 = smov [#allocation7]  }
  0x18   :  { %s44_s6 = sshll.u32 %s642_s30, 4  ;;  %s45_s6 = int_to_ptr.vmem [resolvable:$true] %s44_s6 }
  0x19   :  { %s600_s7 = scalar_lea.vmem %s45_s6, 2048  ;;  %p605_p11 = scmp.lt.s32.totalorder %s45_s6, %s45_s6 }
  0x1a   :  { %p601_p10 = scmp.ne.s32.totalorder %s45_s6, %s600_s7  ;;  %p606_p12 = scmp.lt.s32.totalorder %s600_s7, %s600_s7 }
  0x1c   :  { %p607_p13 = por %p606_p12, %p605_p11 }
  0x1e   :  { %p608_p0 = pnand %p607_p13, %p601_p10 }
  0x20   :  { %611 = shalt.err (!%p608_p0)
}
  0x21   :  { %50 = dma.hbm_to_vmem [thread:$0]  %s707_s3, 2048, %s45_s6, [#allocation6], %s640_s23, %s640_s23, %s641_s24  }
  0x22   :  { %632 = dma.done.wait [#allocation3], 1024  }
  0x23   :  { %633 = vsyncadd [#allocation3], 4294966272 }
  0x24   :  { %634 = dma.done.wait [#allocation6], 4096  }
  0x25   :  { %635 = vsyncadd [#allocation6], 4294963200  ;;  %v85_v0 = vld [vmem:[#allocation5 + $0x78] sm:$0xff]  ;;  %v84_v1 = vld [vmem:[#allocation5 + $0x70] sm:$0xff]  ;;  %s643_s10 = smov [#allocation8]  }
  0x26   :  { %442 = vmatprep.subr.mxu0 %v85_v0  ;;  %v83_v2 = vld [vmem:[#allocation5 + $0x68] sm:$0xff]  ;;  %v82_v3 = vld [vmem:[#allocation5 + $0x60] sm:$0xff]  ;;  %v81_v5 = vld [vmem:[#allocation5 + $0x58] sm:$0xff] }
  0x27   :  { %443 = vmatpush3.msra.mxu0 %v85_v0  ;;  %v62_v4 = vld [vmem:[#allocation2] sm:$0xff]  ;;  %v80_v6 = vld [vmem:[#allocation5 + $0x50] sm:$0xff]  ;;  %v253_v7 = vld [vmem:[#allocation7 + $0x78] sm:$0xff] }
  0x28   :  { %444 = vmatprep.subr.mxu0 %v84_v1  ;;  %474 = vmatprep.mubr.f32.mxu0 %v62_v4  ;;  %v252_v8 = vld [vmem:[#allocation7 + $0x70] sm:$0xff]  ;;  %v79_v9 = vld [vmem:[#allocation5 + $0x48] sm:$0xff]  ;;  %v78_v10 = vld [vmem:[#allocation5 + $0x40] sm:$0xff] }
  0x29   :  { %445 = vmatpush3.msra.mxu0 %v84_v1  ;;  %486 = vmatprep.subr.mxu1 %v253_v7  ;;  %v77_v11 = vld [vmem:[#allocation5 + $0x38] sm:$0xff]  ;;  %v76_v12 = vld [vmem:[#allocation5 + $0x30] sm:$0xff]  ;;  %v75_v13 = vld [vmem:[#allocation5 + $0x28] sm:$0xff] }
  0x2a   :  { %446 = vmatprep.subr.mxu0 %v83_v2  ;;  %487 = vmatpush3.msra.mxu1 %v253_v7  ;;  %v74_v14 = vld [vmem:[#allocation5 + $0x20] sm:$0xff]  ;;  %v73_v15 = vld [vmem:[#allocation5 + $0x18] sm:$0xff]  ;;  %v72_v16 = vld [vmem:[#allocation5 + $0x10] sm:$0xff] }
  0x2b   :  { %447 = vmatpush3.msra.mxu0 %v83_v2  ;;  %488 = vmatprep.subr.mxu1 %v252_v8  ;;  %v71_v17 = vld [vmem:[#allocation5 + $0x8] sm:$0xff]  ;;  %v70_v18 = vld [vmem:[#allocation5] sm:$0xff]  ;;  %v64_v20 = vld [vmem:[#allocation2 + $0x10] sm:$0xff] }
  0x2c   :  { %448 = vmatprep.subr.mxu0 %v82_v3  ;;  %489 = vmatpush3.msra.mxu1 %v252_v8  ;;  %v63_v19 = vld [vmem:[#allocation2 + $0x8] sm:$0xff]  ;;  %v65_v21 = vld [vmem:[#allocation2 + $0x18] sm:$0xff]  ;;  %v66_v22 = vld [vmem:[#allocation2 + $0x20] sm:$0xff] }
  0x2d   :  { %449 = vmatpush3.msra.mxu0 %v82_v3  ;;  %v67_v23 = vld [vmem:[#allocation2 + $0x28] sm:$0xff]  ;;  %v68_v24 = vld [vmem:[#allocation2 + $0x30] sm:$0xff]  ;;  %v69_v25 = vld [vmem:[#allocation2 + $0x38] sm:$0xff] }
  0x2e   :  { %450 = vmatprep.subr.mxu0 %v81_v5  ;;  %v251_v26 = vld [vmem:[#allocation7 + $0x68] sm:$0xff]  ;;  %v250_v27 = vld [vmem:[#allocation7 + $0x60] sm:$0xff]  ;;  %v249_v28 = vld [vmem:[#allocation7 + $0x58] sm:$0xff] }
  0x2f   :  { %451 = vmatpush3.msra.mxu0 %v81_v5  ;;  %490 = vmatprep.subr.mxu1 %v251_v26  ;;  %v248_v29 = vld [vmem:[#allocation7 + $0x50] sm:$0xff]  ;;  %v247_v30 = vld [vmem:[#allocation7 + $0x48] sm:$0xff]  ;;  %v246_v31 = vld [vmem:[#allocation7 + $0x40] sm:$0xff] }
  0x30   :  { %452 = vmatprep.subr.mxu0 %v80_v6  ;;  %491 = vmatpush3.msra.mxu1 %v251_v26  ;;  %v245_v32 = vld [vmem:[#allocation7 + $0x38] sm:$0xff]  ;;  %v244_v33 = vld [vmem:[#allocation7 + $0x30] sm:$0xff]  ;;  %v243_v34 = vld [vmem:[#allocation7 + $0x28] sm:$0xff] }
  0x31   :  { %453 = vmatpush3.msra.mxu0 %v80_v6  ;;  %492 = vmatprep.subr.mxu1 %v250_v27  ;;  %v242_v35 = vld [vmem:[#allocation7 + $0x20] sm:$0xff]  ;;  %v241_v36 = vld [vmem:[#allocation7 + $0x18] sm:$0xff]  ;;  %v240_v37 = vld [vmem:[#allocation7 + $0x10] sm:$0xff] }
  0x32   :  { %454 = vmatprep.subr.mxu0 %v79_v9  ;;  %493 = vmatpush3.msra.mxu1 %v250_v27  ;;  %v239_v38 = vld [vmem:[#allocation7 + $0x8] sm:$0xff]  ;;  %v238_v39 = vld [vmem:[#allocation7] sm:$0xff] }
  0x33   :  { %455 = vmatpush3.msra.mxu0 %v79_v9  ;;  %494 = vmatprep.subr.mxu1 %v249_v28  ;;  %v392_v40 = vld [vmem:[%s706_s2] ss:$0 sm:$0xff] }
  0x34   :  { %456 = vmatprep.subr.mxu0 %v78_v10  ;;  %495 = vmatpush3.msra.mxu1 %v249_v28 }
  0x35   :  { %457 = vmatpush3.msra.mxu0 %v78_v10  ;;  %496 = vmatprep.subr.mxu1 %v248_v29 }
  0x36   :  { %458 = vmatprep.subr.mxu0 %v77_v11  ;;  %497 = vmatpush3.msra.mxu1 %v248_v29 }
  0x37   :  { %459 = vmatpush3.msra.mxu0 %v77_v11  ;;  %498 = vmatprep.subr.mxu1 %v247_v30 }
  0x38   :  { %460 = vmatprep.subr.mxu0 %v76_v12  ;;  %499 = vmatpush3.msra.mxu1 %v247_v30 }
  0x39   :  { %461 = vmatpush3.msra.mxu0 %v76_v12  ;;  %500 = vmatprep.subr.mxu1 %v246_v31 }
  0x3a   :  { %462 = vmatprep.subr.mxu0 %v75_v13  ;;  %501 = vmatpush3.msra.mxu1 %v246_v31 }
  0x3b   :  { %463 = vmatpush3.msra.mxu0 %v75_v13  ;;  %502 = vmatprep.subr.mxu1 %v245_v32 }
  0x3c   :  { %464 = vmatprep.subr.mxu0 %v74_v14  ;;  %503 = vmatpush3.msra.mxu1 %v245_v32 }
  0x3d   :  { %465 = vmatpush3.msra.mxu0 %v74_v14  ;;  %504 = vmatprep.subr.mxu1 %v244_v33 }
  0x3e   :  { %466 = vmatprep.subr.mxu0 %v73_v15  ;;  %505 = vmatpush3.msra.mxu1 %v244_v33  ;;  %v393_v33 = vld [vmem:[%s708_s4] ss:$0 sm:$0xff]  ;;  %s379_s4 = sshll.u32 %s643_s10, 4  ;;  %s380_s4 = int_to_ptr.vmem [resolvable:$true] %s379_s4 }
  0x3f   :  { %467 = vmatpush3.msra.mxu0 %v73_v15  ;;  %506 = vmatprep.subr.mxu1 %v243_v34  ;;  %s612_s11 = scalar_lea.vmem %s380_s4, 1024  ;;  %p617_p2 = scmp.lt.s32.totalorder %s380_s4, %s380_s4 }
  0x40   :  { %468 = vmatprep.subr.mxu0 %v72_v16  ;;  %507 = vmatpush3.msra.mxu1 %v243_v34  ;;  %p613_p1 = scmp.ne.s32.totalorder %s380_s4, %s612_s11  ;;  %p618_p3 = scmp.lt.s32.totalorder %s612_s11, %s612_s11 }
  0x41   :  { %469 = vmatpush3.msra.mxu0 %v72_v16  ;;  %508 = vmatprep.subr.mxu1 %v242_v35 }
  0x42   :  { %470 = vmatprep.subr.mxu0 %v71_v17  ;;  %509 = vmatpush3.msra.mxu1 %v242_v35  ;;  %p619_p4 = por %p618_p3, %p617_p2 }
  0x43   :  { %471 = vmatpush3.msra.mxu0 %v71_v17  ;;  %510 = vmatprep.subr.mxu1 %v241_v36 }
  0x44   :  { %472 = vmatprep.subr.mxu0 %v70_v18  ;;  %511 = vmatpush3.msra.mxu1 %v241_v36  ;;  %p620_p5 = pnand %p619_p4, %p613_p1 }
  0x45   :  { %473 = vmatpush3.msra.mxu0 %v70_v18  ;;  %512 = vmatprep.subr.mxu1 %v240_v37 }
  0x46   :  { %475 = vmatmul.mubr.f32.vlgmr.msra.gmra.mxu0 %v63_v19  ;;  %513 = vmatpush3.msra.mxu1 %v240_v37 }
  0x47   :  { %477 = vmatprep.mubr.f32.mxu0 %v64_v20  ;;  %514 = vmatprep.subr.mxu1 %v239_v38 }
  0x48   :  { %515 = vmatpush3.msra.mxu1 %v239_v38 }
  0x49   :  { %516 = vmatprep.subr.mxu1 %v238_v39 }
  0x4a   :  { %478 = vmatmul.mubr.f32.gmra.mxu0 %v65_v21  ;;  %517 = vmatpush3.msra.mxu1 %v238_v39 }
  0x4b   :  { %480 = vmatprep.mubr.f32.mxu0 %v66_v22 }
  0x4e   :  { %481 = vmatmul.mubr.f32.gmra.mxu0 %v67_v23 }
  0x4f   :  { %483 = vmatprep.mubr.f32.mxu0 %v68_v24 }
  0x52   :  { %484 = vmatmul.mubr.f32.gmra.mxu0 %v69_v25 }
 0x106   :  { %v476_v41 = vpop.f32.mrf.mxu0 }
 0x107   :  { %v165_v42 = vadd.f32 %v476_v41, %v392_v40 }
 0x108   :  { %v159_v43 = vpop.f32.mrf.mxu0 }
 0x109   :  { %v199_v44 = vmul.f32 0.5, %v165_v42  ;;  %v160_v45 = vadd.f32 %v392_v40, %v159_v43 }
 0x10a   :  { %v479_v46 = vpop.f32.mrf.mxu0 }
 0x10b   :  { %536 = vtanh.f32 %v199_v44  ;;  %v198_v47 = vmul.f32 0.5, %v160_v45  ;;  %v175_v48 = vadd.f32 %v479_v46, %v392_v40 }
 0x10c   :  { %v169_v49 = vpop.f32.mrf.mxu0 }
 0x10d   :  { %538 = vtanh.f32 %v198_v47  ;;  %v201_v50 = vmul.f32 0.5, %v175_v48  ;;  %v170_v51 = vadd.f32 %v392_v40, %v169_v49 }
 0x10e   :  { %v482_v52 = vpop.f32.mrf.mxu0 }
 0x10f   :  { %540 = vtanh.f32 %v201_v50  ;;  %v200_v53 = vmul.f32 0.5, %v170_v51  ;;  %v185_v54 = vadd.f32 %v482_v52, %v392_v40 }
 0x110   :  { %v179_v55 = vpop.f32.mrf.mxu0 }
 0x111   :  { %542 = vtanh.f32 %v200_v53  ;;  %v203_v56 = vmul.f32 0.5, %v185_v54  ;;  %v180_v57 = vadd.f32 %v392_v40, %v179_v55 }
 0x112   :  { %v485_v58 = vpop.f32.mrf.mxu0 }
 0x113   :  { %544 = vtanh.f32 %v203_v56  ;;  %v202_v59 = vmul.f32 0.5, %v180_v57  ;;  %v195_v60 = vadd.f32 %v485_v58, %v392_v40 }
 0x114   :  { %v189_v61 = vpop.f32.mrf.mxu0 }
 0x115   :  { %546 = vtanh.f32 %v202_v59  ;;  %v205_v62 = vmul.f32 0.5, %v195_v60  ;;  %v190_v63 = vadd.f32 %v392_v40, %v189_v61 }
 0x117   :  { %548 = vtanh.f32 %v205_v62  ;;  %v204_v0 = vmul.f32 0.5, %v190_v63 }
 0x118   :  { %v537_v1 = vpop.eup %536 }
 0x119   :  { %v215_v2 = vmul.f32 0.5, %v537_v1  ;;  %550 = vtanh.f32 %v204_v0 }
 0x11a   :  { %v539_v3 = vpop.eup %538 }
 0x11b   :  { %v214_v4 = vmul.f32 0.5, %v539_v3  ;;  %v223_v6 = vadd.f32 0.5, %v215_v2 }
 0x11c   :  { %v541_v5 = vpop.eup %540 }
 0x11d   :  { %v217_v7 = vmul.f32 0.5, %v541_v5  ;;  %v222_v8 = vadd.f32 0.5, %v214_v4  ;;  %v231_v13 = vmul.f32 %v223_v6, %v165_v42 }
 0x11e   :  { %v543_v9 = vpop.eup %542 }
 0x11f   :  { %v216_v10 = vmul.f32 0.5, %v543_v9  ;;  %v230_v11 = vmul.f32 %v222_v8, %v160_v45  ;;  %v225_v14 = vadd.f32 0.5, %v217_v7 }
 0x120   :  { %v545_v12 = vpop.eup %544 }
 0x121   :  { %v224_v15 = vadd.f32 0.5, %v216_v10  ;;  %v219_v16 = vmul.f32 0.5, %v545_v12  ;;  %518 = vmatprep.mubr.f32.mxu1 %v230_v11  ;;  %v233_v21 = vmul.f32 %v225_v14, %v175_v48 }
 0x122   :  { %v547_v17 = vpop.eup %546  ;;  %519 = vmatmul.mubr.f32.vlgmr.msra.gmra.mxu1 %v231_v13 }
 0x123   :  { %v232_v18 = vmul.f32 %v224_v15, %v170_v51  ;;  %v218_v19 = vmul.f32 0.5, %v547_v17  ;;  %v227_v22 = vadd.f32 0.5, %v219_v16 }
 0x124   :  { %v549_v20 = vpop.eup %548 }
 0x125   :  { %v226_v23 = vadd.f32 0.5, %v218_v19  ;;  %v221_v24 = vmul.f32 0.5, %v549_v20  ;;  %521 = vmatprep.mubr.f32.mxu1 %v232_v18  ;;  %v235_v28 = vmul.f32 %v227_v22, %v185_v54 }
 0x126   :  { %v551_v25 = vpop.eup %550  ;;  %522 = vmatmul.mubr.f32.gmra.mxu1 %v233_v21 }
 0x127   :  { %v234_v26 = vmul.f32 %v226_v23, %v180_v57  ;;  %v220_v27 = vmul.f32 0.5, %v551_v25  ;;  %v229_v29 = vadd.f32 0.5, %v221_v24 }
 0x129   :  { %v228_v30 = vadd.f32 0.5, %v220_v27  ;;  %524 = vmatprep.mubr.f32.mxu1 %v234_v26  ;;  %v237_v32 = vmul.f32 %v229_v29, %v195_v60 }
 0x12a   :  { %525 = vmatmul.mubr.f32.gmra.mxu1 %v235_v28 }
 0x12b   :  { %v236_v31 = vmul.f32 %v228_v30, %v190_v63 }
 0x12d   :  { %527 = vmatprep.mubr.f32.mxu1 %v236_v31 }
 0x12e   :  { %528 = vmatmul.mubr.f32.gmra.mxu1 %v237_v32 }
 0x1e2   :  { %v520_v34 = vpop.f32.mrf.mxu1 }
 0x1e3   :  { %v333_v35 = vadd.f32 %v520_v34, %v393_v33 }
 0x1e4   :  { %v327_v36 = vpop.f32.mrf.mxu1 }
 0x1e5   :  { %367 = vst [vmem:[#allocation8 + $0x8] sm:$0xff] %v333_v35  ;;  %v328_v37 = vadd.f32 %v393_v33, %v327_v36 }
 0x1e6   :  { %v523_v38 = vpop.f32.mrf.mxu1 }
 0x1e7   :  { %366 = vst [vmem:[#allocation8] sm:$0xff] %v328_v37  ;;  %v343_v39 = vadd.f32 %v523_v38, %v393_v33 }
 0x1e8   :  { %v337_v40 = vpop.f32.mrf.mxu1 }
 0x1e9   :  { %369 = vst [vmem:[#allocation8 + $0x18] sm:$0xff] %v343_v39  ;;  %v338_v41 = vadd.f32 %v393_v33, %v337_v40 }
 0x1ea   :  { %v526_v42 = vpop.f32.mrf.mxu1 }
 0x1eb   :  { %368 = vst [vmem:[#allocation8 + $0x10] sm:$0xff] %v338_v41  ;;  %v353_v43 = vadd.f32 %v526_v42, %v393_v33 }
 0x1ec   :  { %v347_v44 = vpop.f32.mrf.mxu1 }
 0x1ed   :  { %371 = vst [vmem:[#allocation8 + $0x28] sm:$0xff] %v353_v43  ;;  %v348_v45 = vadd.f32 %v393_v33, %v347_v44 }
 0x1ee   :  { %v529_v46 = vpop.f32.mrf.mxu1 }
 0x1ef   :  { %370 = vst [vmem:[#allocation8 + $0x20] sm:$0xff] %v348_v45  ;;  %v363_v47 = vadd.f32 %v529_v46, %v393_v33 }
 0x1f0   :  { %v357_v48 = vpop.f32.mrf.mxu1 }
 0x1f1   :  { %373 = vst [vmem:[#allocation8 + $0x38] sm:$0xff] %v363_v47  ;;  %v358_v49 = vadd.f32 %v393_v33, %v357_v48 }
 0x1f3   :  { %372 = vst [vmem:[#allocation8 + $0x30] sm:$0xff] %v358_v49 }
 0x1f4   :  { %623 = shalt.err (!%p620_p5)
}
 0x1f5   :  { %385 = dma.vmem_to_hbm [thread:$0]  %s380_s4, 1024, %s709_s5, [#allocation4], %s640_s23, %s640_s23, %s641_s24  }
 0x1f6   :  { %636 = dma.done.wait [#allocation4], 1024  }
 0x1f7   :  { %637 = vsyncadd [#allocation4], 4294966272 }
 0x1f8   :  { %389 = vsyncpa [#allocation3], 1 }
 0x1f9   :  { %390 = vsyncpa [#allocation6], 1 }
 0x1fa   :  { %391 = vsyncpa [#allocation4], 1 }

// kernel: tpu_custom_call.1
= control target key start
LH: loop header
LB: loop body
LE: loop exit
PB: predicated region body
PF: predicated region fallthrough
CT: control target
= control target key end

     0   :  { %10 = vsyncpa [#allocation3], 0  ;;  %s704_s0 = inlined_call_operand.hbm [shape: f32[64,128], index: 0, kind: input, shape index: {}]   ;;  %s705_s1 = inlined_call_operand.hbm [shape: f32[128,128], index: 1, kind: input, shape index: {}]   ;;  %s706_s2 = inlined_call_operand.vmem [shape: f32[1,128], index: 2, kind: input, shape index: {}]   ;;  %s707_s3 = inlined_call_operand.hbm [shape: f32[128,128], index: 3, kind: input, shape index: {}]   ;;  %s708_s4 = inlined_call_operand.vmem [shape: f32[1,128], index: 4, kind: input, shape index: {}]   ;;  %s709_s5 = inlined_call_operand.hbm [shape: f32[64,128], index: 5, kind: output, shape index: {}]  }
   0x1   :  { %11 = vsyncpa [#allocation6], 0 }
   0x2   :  { %12 = vsyncpa [#allocation4], 0  ;;  %s638_s18 = smov [#allocation5]   ;;  %s639_s20 = smov [#allocation2]  }
   0x3   :  { %s30_s19 = sshll.u32 %s638_s18, 4  ;;  %s18_s21 = sshll.u32 %s639_s20, 4  ;;  %s31_s19 = int_to_ptr.vmem [resolvable:$true] %s30_s19  ;;  %s19_s21 = int_to_ptr.vmem [resolvable:$true] %s18_s21 }
   0x4   :  { %s560_s22 = scalar_lea.vmem %s31_s19, 2048  ;;  %p565_p1 = scmp.lt.s32.totalorder %s31_s19, %s31_s19 }
   0x5   :  { %p561_p0 = scmp.ne.s32.totalorder %s31_s19, %s560_s22  ;;  %p566_p2 = scmp.lt.s32.totalorder %s560_s22, %s560_s22 }
   0x7   :  { %p567_p3 = por %p566_p2, %p565_p1 }
   0x9   :  { %p568_p4 = pnand %p567_p3, %p561_p0 }
   0xb   :  { %571 = shalt.err (!%p568_p4)
}
   0xc   :  { %s640_s23 = smov 128   ;;  %s641_s24 = smov 8  }
   0xd   :  { %36 = dma.hbm_to_vmem [thread:$0]  %s705_s1, 2048, %s31_s19, [#allocation6], %s640_s23, %s640_s23, %s641_s24  }
   0xe   :  { %s580_s27 = scalar_lea.vmem %s19_s21, 1024  ;;  %p585_p6 = scmp.lt.s32.totalorder %s19_s21, %s19_s21 }
   0xf   :  { %p581_p5 = scmp.ne.s32.totalorder %s19_s21, %s580_s27  ;;  %p586_p7 = scmp.lt.s32.totalorder %s580_s27, %s580_s27 }
  0x11   :  { %p587_p8 = por %p586_p7, %p585_p6 }
  0x13   :  { %p588_p9 = pnand %p587_p8, %p581_p5 }
  0x15   :  { %591 = shalt.err (!%p588_p9)
}
  0x16   :  { %24 = dma.hbm_to_vmem [thread:$0]  %s704_s0, 1024, %s19_s21, [#allocation3], %s640_s23, %s640_s23, %s641_s24  }
  0x17   :  { %s642_s30 = smov [#allocation7]  }
  0x18   :  { %s44_s6 = sshll.u32 %s642_s30, 4  ;;  %s45_s6 = int_to_ptr.vmem [resolvable:$true] %s44_s6 }
  0x19   :  { %s600_s7 = scalar_lea.vmem %s45_s6, 2048  ;;  %p605_p11 = scmp.lt.s32.totalorder %s45_s6, %s45_s6 }
  0x1a   :  { %p601_p10 = scmp.ne.s32.totalorder %s45_s6, %s600_s7  ;;  %p606_p12 = scmp.lt.s32.totalorder %s600_s7, %s600_s7 }
  0x1c   :  { %p607_p13 = por %p606_p12, %p605_p11 }
  0x1e   :  { %p608_p0 = pnand %p607_p13, %p601_p10 }
  0x20   :  { %611 = shalt.err (!%p608_p0)
}
  0x21   :  { %50 = dma.hbm_to_vmem [thread:$0]  %s707_s3, 2048, %s45_s6, [#allocation6], %s640_s23, %s640_s23, %s641_s24  }
  0x22   :  { %632 = dma.done.wait [#allocation3], 1024  }
  0x23   :  { %633 = vsyncadd [#allocation3], 4294966272 }
  0x24   :  { %634 = dma.done.wait [#allocation6], 4096  }
  0x25   :  { %635 = vsyncadd [#allocation6], 4294963200  ;;  %v85_v0 = vld [vmem:[#allocation5 + $0x78] sm:$0xff]  ;;  %v84_v1 = vld [vmem:[#allocation5 + $0x70] sm:$0xff]  ;;  %s643_s10 = smov [#allocation8]  }
  0x26   :  { %442 = vmatprep.subr.mxu0 %v85_v0  ;;  %v83_v2 = vld [vmem:[#allocation5 + $0x68] sm:$0xff]  ;;  %v82_v3 = vld [vmem:[#allocation5 + $0x60] sm:$0xff]  ;;  %v81_v5 = vld [vmem:[#allocation5 + $0x58] sm:$0xff] }
  0x27   :  { %443 = vmatpush3.msra.mxu0 %v85_v0  ;;  %v62_v4 = vld [vmem:[#allocation2] sm:$0xff]  ;;  %v80_v6 = vld [vmem:[#allocation5 + $0x50] sm:$0xff]  ;;  %v253_v7 = vld [vmem:[#allocation7 + $0x78] sm:$0xff] }
  0x28   :  { %444 = vmatprep.subr.mxu0 %v84_v1  ;;  %474 = vmatprep.mubr.f32.mxu0 %v62_v4  ;;  %v252_v8 = vld [vmem:[#allocation7 + $0x70] sm:$0xff]  ;;  %v79_v9 = vld [vmem:[#allocation5 + $0x48] sm:$0xff]  ;;  %v78_v10 = vld [vmem:[#allocation5 + $0x40] sm:$0xff] }
  0x29   :  { %445 = vmatpush3.msra.mxu0 %v84_v1  ;;  %486 = vmatprep.subr.mxu1 %v253_v7  ;;  %v77_v11 = vld [vmem:[#allocation5 + $0x38] sm:$0xff]  ;;  %v76_v12 = vld [vmem:[#allocation5 + $0x30] sm:$0xff]  ;;  %v75_v13 = vld [vmem:[#allocation5 + $0x28] sm:$0xff] }
  0x2a   :  { %446 = vmatprep.subr.mxu0 %v83_v2  ;;  %487 = vmatpush3.msra.mxu1 %v253_v7  ;;  %v74_v14 = vld [vmem:[#allocation5 + $0x20] sm:$0xff]  ;;  %v73_v15 = vld [vmem:[#allocation5 + $0x18] sm:$0xff]  ;;  %v72_v16 = vld [vmem:[#allocation5 + $0x10] sm:$0xff] }
  0x2b   :  { %447 = vmatpush3.msra.mxu0 %v83_v2  ;;  %488 = vmatprep.subr.mxu1 %v252_v8  ;;  %v71_v17 = vld [vmem:[#allocation5 + $0x8] sm:$0xff]  ;;  %v70_v18 = vld [vmem:[#allocation5] sm:$0xff]  ;;  %v64_v20 = vld [vmem:[#allocation2 + $0x10] sm:$0xff] }
  0x2c   :  { %448 = vmatprep.subr.mxu0 %v82_v3  ;;  %489 = vmatpush3.msra.mxu1 %v252_v8  ;;  %v63_v19 = vld [vmem:[#allocation2 + $0x8] sm:$0xff]  ;;  %v65_v21 = vld [vmem:[#allocation2 + $0x18] sm:$0xff]  ;;  %v66_v22 = vld [vmem:[#allocation2 + $0x20] sm:$0xff] }
  0x2d   :  { %449 = vmatpush3.msra.mxu0 %v82_v3  ;;  %v67_v23 = vld [vmem:[#allocation2 + $0x28] sm:$0xff]  ;;  %v68_v24 = vld [vmem:[#allocation2 + $0x30] sm:$0xff]  ;;  %v69_v25 = vld [vmem:[#allocation2 + $0x38] sm:$0xff] }
  0x2e   :  { %450 = vmatprep.subr.mxu0 %v81_v5  ;;  %v251_v26 = vld [vmem:[#allocation7 + $0x68] sm:$0xff]  ;;  %v250_v27 = vld [vmem:[#allocation7 + $0x60] sm:$0xff]  ;;  %v249_v28 = vld [vmem:[#allocation7 + $0x58] sm:$0xff] }
  0x2f   :  { %451 = vmatpush3.msra.mxu0 %v81_v5  ;;  %490 = vmatprep.subr.mxu1 %v251_v26  ;;  %v248_v29 = vld [vmem:[#allocation7 + $0x50] sm:$0xff]  ;;  %v247_v30 = vld [vmem:[#allocation7 + $0x48] sm:$0xff]  ;;  %v246_v31 = vld [vmem:[#allocation7 + $0x40] sm:$0xff] }
  0x30   :  { %452 = vmatprep.subr.mxu0 %v80_v6  ;;  %491 = vmatpush3.msra.mxu1 %v251_v26  ;;  %v245_v32 = vld [vmem:[#allocation7 + $0x38] sm:$0xff]  ;;  %v244_v33 = vld [vmem:[#allocation7 + $0x30] sm:$0xff]  ;;  %v243_v34 = vld [vmem:[#allocation7 + $0x28] sm:$0xff] }
  0x31   :  { %453 = vmatpush3.msra.mxu0 %v80_v6  ;;  %492 = vmatprep.subr.mxu1 %v250_v27  ;;  %v242_v35 = vld [vmem:[#allocation7 + $0x20] sm:$0xff]  ;;  %v241_v36 = vld [vmem:[#allocation7 + $0x18] sm:$0xff]  ;;  %v240_v37 = vld [vmem:[#allocation7 + $0x10] sm:$0xff] }
  0x32   :  { %454 = vmatprep.subr.mxu0 %v79_v9  ;;  %493 = vmatpush3.msra.mxu1 %v250_v27  ;;  %v239_v38 = vld [vmem:[#allocation7 + $0x8] sm:$0xff]  ;;  %v238_v39 = vld [vmem:[#allocation7] sm:$0xff] }
  0x33   :  { %455 = vmatpush3.msra.mxu0 %v79_v9  ;;  %494 = vmatprep.subr.mxu1 %v249_v28  ;;  %v392_v40 = vld [vmem:[%s706_s2] ss:$0 sm:$0xff] }
  0x34   :  { %456 = vmatprep.subr.mxu0 %v78_v10  ;;  %495 = vmatpush3.msra.mxu1 %v249_v28 }
  0x35   :  { %457 = vmatpush3.msra.mxu0 %v78_v10  ;;  %496 = vmatprep.subr.mxu1 %v248_v29 }
  0x36   :  { %458 = vmatprep.subr.mxu0 %v77_v11  ;;  %497 = vmatpush3.msra.mxu1 %v248_v29 }
  0x37   :  { %459 = vmatpush3.msra.mxu0 %v77_v11  ;;  %498 = vmatprep.subr.mxu1 %v247_v30 }
  0x38   :  { %460 = vmatprep.subr.mxu0 %v76_v12  ;;  %499 = vmatpush3.msra.mxu1 %v247_v30 }
  0x39   :  { %461 = vmatpush3.msra.mxu0 %v76_v12  ;;  %500 = vmatprep.subr.mxu1 %v246_v31 }
  0x3a   :  { %462 = vmatprep.subr.mxu0 %v75_v13  ;;  %501 = vmatpush3.msra.mxu1 %v246_v31 }
  0x3b   :  { %463 = vmatpush3.msra.mxu0 %v75_v13  ;;  %502 = vmatprep.subr.mxu1 %v245_v32 }
  0x3c   :  { %464 = vmatprep.subr.mxu0 %v74_v14  ;;  %503 = vmatpush3.msra.mxu1 %v245_v32 }
  0x3d   :  { %465 = vmatpush3.msra.mxu0 %v74_v14  ;;  %504 = vmatprep.subr.mxu1 %v244_v33 }
  0x3e   :  { %466 = vmatprep.subr.mxu0 %v73_v15  ;;  %505 = vmatpush3.msra.mxu1 %v244_v33  ;;  %v393_v33 = vld [vmem:[%s708_s4] ss:$0 sm:$0xff]  ;;  %s379_s4 = sshll.u32 %s643_s10, 4  ;;  %s380_s4 = int_to_ptr.vmem [resolvable:$true] %s379_s4 }
  0x3f   :  { %467 = vmatpush3.msra.mxu0 %v73_v15  ;;  %506 = vmatprep.subr.mxu1 %v243_v34  ;;  %s612_s11 = scalar_lea.vmem %s380_s4, 1024  ;;  %p617_p2 = scmp.lt.s32.totalorder %s380_s4, %s380_s4 }
  0x40   :  { %468 = vmatprep.subr.mxu0 %v72_v16  ;;  %507 = vmatpush3.msra.mxu1 %v243_v34  ;;  %p613_p1 = scmp.ne.s32.totalorder %s380_s4, %s612_s11  ;;  %p618_p3 = scmp.lt.s32.totalorder %s612_s11, %s612_s11 }
  0x41   :  { %469 = vmatpush3.msra.mxu0 %v72_v16  ;;  %508 = vmatprep.subr.mxu1 %v242_v35 }
  0x42   :  { %470 = vmatprep.subr.mxu0 %v71_v17  ;;  %509 = vmatpush3.msra.mxu1 %v242_v35  ;;  %p619_p4 = por %p618_p3, %p617_p2 }
  0x43   :  { %471 = vmatpush3.msra.mxu0 %v71_v17  ;;  %510 = vmatprep.subr.mxu1 %v241_v36 }
  0x44   :  { %472 = vmatprep.subr.mxu0 %v70_v18  ;;  %511 = vmatpush3.msra.mxu1 %v241_v36  ;;  %p620_p5 = pnand %p619_p4, %p613_p1 }
  0x45   :  { %473 = vmatpush3.msra.mxu0 %v70_v18  ;;  %512 = vmatprep.subr.mxu1 %v240_v37 }
  0x46   :  { %475 = vmatmul.mubr.f32.vlgmr.msra.gmra.mxu0 %v63_v19  ;;  %513 = vmatpush3.msra.mxu1 %v240_v37 }
  0x47   :  { %477 = vmatprep.mubr.f32.mxu0 %v64_v20  ;;  %514 = vmatprep.subr.mxu1 %v239_v38 }
  0x48   :  { %515 = vmatpush3.msra.mxu1 %v239_v38 }
  0x49   :  { %516 = vmatprep.subr.mxu1 %v238_v39 }
  0x4a   :  { %478 = vmatmul.mubr.f32.gmra.mxu0 %v65_v21  ;;  %517 = vmatpush3.msra.mxu1 %v238_v39 }
  0x4b   :  { %480 = vmatprep.mubr.f32.mxu0 %v66_v22 }
  0x4e   :  { %481 = vmatmul.mubr.f32.gmra.mxu0 %v67_v23 }
  0x4f   :  { %483 = vmatprep.mubr.f32.mxu0 %v68_v24 }
  0x52   :  { %484 = vmatmul.mubr.f32.gmra.mxu0 %v69_v25 }
 0x106   :  { %v476_v41 = vpop.f32.mrf.mxu0 }
 0x107   :  { %v165_v42 = vadd.f32 %v476_v41, %v392_v40 }
 0x108   :  { %v159_v43 = vpop.f32.mrf.mxu0 }
 0x109   :  { %v199_v44 = vmul.f32 0.5, %v165_v42  ;;  %v160_v45 = vadd.f32 %v392_v40, %v159_v43 }
 0x10a   :  { %v479_v46 = vpop.f32.mrf.mxu0 }
 0x10b   :  { %536 = vtanh.f32 %v199_v44  ;;  %v198_v47 = vmul.f32 0.5, %v160_v45  ;;  %v175_v48 = vadd.f32 %v479_v46, %v392_v40 }
 0x10c   :  { %v169_v49 = vpop.f32.mrf.mxu0 }
 0x10d   :  { %538 = vtanh.f32 %v198_v47  ;;  %v201_v50 = vmul.f32 0.5, %v175_v48  ;;  %v170_v51 = vadd.f32 %v392_v40, %v169_v49 }
 0x10e   :  { %v482_v52 = vpop.f32.mrf.mxu0 }
 0x10f   :  { %540 = vtanh.f32 %v201_v50  ;;  %v200_v53 = vmul.f32 0.5, %v170_v51  ;;  %v185_v54 = vadd.f32 %v482_v52, %v392_v40 }
 0x110   :  { %v179_v55 = vpop.f32.mrf.mxu0 }
 0x111   :  { %542 = vtanh.f32 %v200_v53  ;;  %v203_v56 = vmul.f32 0.5, %v185_v54  ;;  %v180_v57 = vadd.f32 %v392_v40, %v179_v55 }
 0x112   :  { %v485_v58 = vpop.f32.mrf.mxu0 }
 0x113   :  { %544 = vtanh.f32 %v203_v56  ;;  %v202_v59 = vmul.f32 0.5, %v180_v57  ;;  %v195_v60 = vadd.f32 %v485_v58, %v392_v40 }
 0x114   :  { %v189_v61 = vpop.f32.mrf.mxu0 }
 0x115   :  { %546 = vtanh.f32 %v202_v59  ;;  %v205_v62 = vmul.f32 0.5, %v195_v60  ;;  %v190_v63 = vadd.f32 %v392_v40, %v189_v61 }
 0x117   :  { %548 = vtanh.f32 %v205_v62  ;;  %v204_v0 = vmul.f32 0.5, %v190_v63 }
 0x118   :  { %v537_v1 = vpop.eup %536 }
 0x119   :  { %v215_v2 = vmul.f32 0.5, %v537_v1  ;;  %550 = vtanh.f32 %v204_v0 }
 0x11a   :  { %v539_v3 = vpop.eup %538 }
 0x11b   :  { %v214_v4 = vmul.f32 0.5, %v539_v3  ;;  %v223_v6 = vadd.f32 0.5, %v215_v2 }
 0x11c   :  { %v541_v5 = vpop.eup %540 }
 0x11d   :  { %v217_v7 = vmul.f32 0.5, %v541_v5  ;;  %v222_v8 = vadd.f32 0.5, %v214_v4  ;;  %v231_v13 = vmul.f32 %v223_v6, %v165_v42 }
 0x11e   :  { %v543_v9 = vpop.eup %542 }
 0x11f   :  { %v216_v10 = vmul.f32 0.5, %v543_v9  ;;  %v230_v11 = vmul.f32 %v222_v8, %v160_v45  ;;  %v225_v14 = vadd.f32 0.5, %v217_v7 }
 0x120   :  { %v545_v12 = vpop.eup %544 }
 0x121   :  { %v224_v15 = vadd.f32 0.5, %v216_v10  ;;  %v219_v16 = vmul.f32 0.5, %v545_v12  ;;  %518 = vmatprep.mubr.f32.mxu1 %v230_v11  ;;  %v233_v21 = vmul.f32 %v225_v14, %v175_v48 }
 0x122   :  { %v547_v17 = vpop.eup %546  ;;  %519 = vmatmul.mubr.f32.vlgmr.msra.gmra.mxu1 %v231_v13 }
 0x123   :  { %v232_v18 = vmul.f32 %v224_v15, %v170_v51  ;;  %v218_v19 = vmul.f32 0.5, %v547_v17  ;;  %v227_v22 = vadd.f32 0.5, %v219_v16 }
 0x124   :  { %v549_v20 = vpop.eup %548 }
 0x125   :  { %v226_v23 = vadd.f32 0.5, %v218_v19  ;;  %v221_v24 = vmul.f32 0.5, %v549_v20  ;;  %521 = vmatprep.mubr.f32.mxu1 %v232_v18  ;;  %v235_v28 = vmul.f32 %v227_v22, %v185_v54 }
 0x126   :  { %v551_v25 = vpop.eup %550  ;;  %522 = vmatmul.mubr.f32.gmra.mxu1 %v233_v21 }
 0x127   :  { %v234_v26 = vmul.f32 %v226_v23, %v180_v57  ;;  %v220_v27 = vmul.f32 0.5, %v551_v25  ;;  %v229_v29 = vadd.f32 0.5, %v221_v24 }
 0x129   :  { %v228_v30 = vadd.f32 0.5, %v220_v27  ;;  %524 = vmatprep.mubr.f32.mxu1 %v234_v26  ;;  %v237_v32 = vmul.f32 %v229_v29, %v195_v60 }
 0x12a   :  { %525 = vmatmul.mubr.f32.gmra.mxu1 %v235_v28 }
 0x12b   :  { %v236_v31 = vmul.f32 %v228_v30, %v190_v63 }
 0x12d   :  { %527 = vmatprep.mubr.f32.mxu1 %v236_v31 }
 0x12e   :  { %528 = vmatmul.mubr.f32.gmra.mxu1 %v237_v32 }
 0x1e2   :  { %v520_v34 = vpop.f32.mrf.mxu1 }
 0x1e3   :  { %v333_v35 = vadd.f32 %v520_v34, %v393_v33 }
 0x1e4   :  { %v327_v36 = vpop.f32.mrf.mxu1 }
 0x1e5   :  { %367 = vst [vmem:[#allocation8 + $0x8] sm:$0xff] %v333_v35  ;;  %v328_v37 = vadd.f32 %v393_v33, %v327_v36 }
 0x1e6   :  { %v523_v38 = vpop.f32.mrf.mxu1 }
 0x1e7   :  { %366 = vst [vmem:[#allocation8] sm:$0xff] %v328_v37  ;;  %v343_v39 = vadd.f32 %v523_v38, %v393_v33 }
 0x1e8   :  { %v337_v40 = vpop.f32.mrf.mxu1 }
 0x1e9   :  { %369 = vst [vmem:[#allocation8 + $0x18] sm:$0xff] %v343_v39  ;;  %v338_v41 = vadd.f32 %v393_v33, %v337_v40 }
 0x1ea   :  { %v526_v42 = vpop.f32.mrf.mxu1 }
 0x1eb   :  { %368 = vst [vmem:[#allocation8 + $0x10] sm:$0xff] %v338_v41  ;;  %v353_v43 = vadd.f32 %v526_v42, %v393_v33 }
 0x1ec   :  { %v347_v44 = vpop.f32.mrf.mxu1 }
 0x1ed   :  { %371 = vst [vmem:[#allocation8 + $0x28] sm:$0xff] %v353_v43  ;;  %v348_v45 = vadd.f32 %v393_v33, %v347_v44 }
 0x1ee   :  { %v529_v46 = vpop.f32.mrf.mxu1 }
 0x1ef   :  { %370 = vst [vmem:[#allocation8 + $0x20] sm:$0xff] %v348_v45  ;;  %v363_v47 = vadd.f32 %v529_v46, %v393_v33 }
 0x1f0   :  { %v357_v48 = vpop.f32.mrf.mxu1 }
 0x1f1   :  { %373 = vst [vmem:[#allocation8 + $0x38] sm:$0xff] %v363_v47  ;;  %v358_v49 = vadd.f32 %v393_v33, %v357_v48 }
 0x1f3   :  { %372 = vst [vmem:[#allocation8 + $0x30] sm:$0xff] %v358_v49 }
 0x1f4   :  { %623 = shalt.err (!%p620_p5)
}
 0x1f5   :  { %385 = dma.vmem_to_hbm [thread:$0]  %s380_s4, 1024, %s709_s5, [#allocation4], %s640_s23, %s640_s23, %s641_s24  }
 0x1f6   :  { %636 = dma.done.wait [#allocation4], 1024  }
 0x1f7   :  { %637 = vsyncadd [#allocation4], 4294966272 }
 0x1f8   :  { %389 = vsyncpa [#allocation3], 1 }
 0x1f9   :  { %390 = vsyncpa [#allocation6], 1 }
 0x1fa   :  { %391 = vsyncpa [#allocation4], 1 }

</bundles_post_ra>
